<compile_context>
chip_gen: v5e
topology: v5e:2x2
jax: 0.10.0
libtpu: 0.0.40
codegen_flags: <defaults>
</compile_context>

<pallas_src>
import jax
import jax.numpy as jnp
from jax.experimental import pallas as pl
from jax.experimental.pallas import tpu as pltpu

_MiB = 1024 * 1024


def _cdiv(a, b):
    return -(-a // b)


def _round_up(a, b):
    return _cdiv(a, b) * b


def _sublane(dtype):
    """Sublane packing for this dtype: 8 (f32), 16 (bf16), 32 (int8/fp8)."""
    return max(8, 32 // jnp.dtype(dtype).itemsize)


def _vmem_capacity_bytes():
    """Physical per-TensorCore VMEM; conservative 64 MiB (v7x) fallback."""
    try:
        info = pltpu.get_tpu_info()
        for attr in ("vmem_capacity_bytes", "vmem_size_bytes", "vmem_bytes"):
            v = getattr(info, attr, None)
            if v:
                return int(v)
    except Exception:
        pass
    return 64 * _MiB


def _choose_layout(total, sub):
    """Lane-dense (rows, lanes) view of the flat length-`total` buffer:
    lanes a multiple of 128, rows preferably a multiple of `sub`.
    Returns None if `total` has no 128-multiple factorization (caller pads)."""
    best = None
    for lanes in (512, 1024, 256, 2048, 128, 4096, 8192):
        if total % lanes:
            continue
        rows = total // lanes
        if rows % sub == 0:
            return rows, lanes
        if best is None:
            best = (rows, lanes)
    return best


def _choose_row_tile(rows, lanes, itemsize, sub, total_bytes, ws_cap_bytes):
    """Row-tile TN. Per-step double-buffered working set is
    ~8 * TN * lanes * itemsize bytes (2 input bufs + 2 triple-wide output
    bufs); keep it under ws_cap_bytes. For inputs > 1 MiB force >= 2 (ideally
    an even number of) grid steps so both v7x TensorCores get work."""
    cap = max(sub, (ws_cap_bytes // (8 * lanes * itemsize)) // sub * sub)
    tn = min(rows, cap)
    if total_bytes > _MiB and rows > sub:
        # Guarantee at least a 2-way split of the grid.
        half = _round_up(_cdiv(rows, 2), sub)
        if half < rows:
            tn = min(tn, half)
        # Prefer an even number of steps (balanced split across 2 cores).
        steps = _cdiv(rows, tn)
        if steps > 1 and steps % 2 == 1:
            cand = _round_up(_cdiv(rows, steps + 1), sub)
            if sub <= cand < tn:
                tn = cand
    if tn < rows:
        tn = max(sub, (tn // sub) * sub)
    return tn


def _functionals_kernel(x_ref, o_ref):
    # x_ref: (TN, lanes)   o_ref: (3, TN, lanes)
    x = x_ref[...]
    x = x + x                                    # myadd.add(x, x)
    x = x * x                                    # mymul.mul(x, x)
    x = jnp.maximum(x + x, jnp.zeros_like(x))    # myadd_relu.add_relu(x, x)
    w = x + jnp.asarray(-0.5, x.dtype)           # my_scalar_add.add_scalar(x, -0.5)
    w = w * jnp.asarray(0.5, x.dtype)            # my_scalar_mul.mul_scalar(w, 0.5)
    # mycat.cat([x, x, x], dim=0): three identical replica slabs.
    o_ref[0, :, :] = w
    o_ref[1, :, :] = w
    o_ref[2, :, :] = w


def model_with_functionals(x):
    """x: (N, C, H, W) float -> (3N, C, H, W) float."""
    n = x.shape[0]
    total = int(x.size)
    itemsize = jnp.dtype(x.dtype).itemsize
    sub = _sublane(x.dtype)

    # Generation-aware VMEM budget: leave 16 MiB headroom under physical,
    # never request more than 64 MiB scoped; working-set cap is half of that.
    physical = _vmem_capacity_bytes()
    vmem_limit = max(16 * _MiB, min(physical - 16 * _MiB, 64 * _MiB))
    ws_cap = vmem_limit // 2

    # Lane-dense layout; pad the flat buffer if `total` has no 128-factor so
    # the last dim is always a multiple of 128 (no masked vst.msk stores).
    flat = x.reshape(-1)
    layout = _choose_layout(total, sub)
    padded_total = total
    if layout is None:
        unit = sub * 128
        padded_total = _round_up(total, unit)
        flat = jnp.pad(flat, (0, padded_total - total))
        layout = _choose_layout(padded_total, sub)
    rows, lanes = layout

    tn = _choose_row_tile(rows, lanes, itemsize, sub,
                          total_bytes=padded_total * itemsize,
                          ws_cap_bytes=ws_cap)
    grid = (_cdiv(rows, tn),)

    x2d = flat.reshape(rows, lanes)

    out3d = pl.pallas_call(
        _functionals_kernel,
        out_shape=jax.ShapeDtypeStruct((3, rows, lanes), x.dtype),
        grid_spec=pl.GridSpec(
            grid=grid,
            in_specs=[pl.BlockSpec((tn, lanes), lambda i: (i, 0))],
            out_specs=pl.BlockSpec((3, tn, lanes), lambda i: (0, i, 0)),
        ),
        compiler_params=pltpu.CompilerParams(
            dimension_semantics=("parallel",),
            vmem_limit_bytes=int(vmem_limit),
        ),
        cost_estimate=pl.CostEstimate(
            flops=6 * padded_total,
            transcendentals=0,
            # 1x read + 3x write, dtype-aware.
            bytes_accessed=4 * padded_total * itemsize,
        ),
    )(x2d)

    # Drop padding (if any) and restore (3N, C, H, W).  Reshape is contiguous.
    out_flat = out3d.reshape(3, rows * lanes)[:, :total]
    return out_flat.reshape((3 * n,) + x.shape[1:])


def _reference(x):
    # Pure-JAX reference matching the PyTorch module op-for-op.
    x = jnp.concatenate([x, x, x], axis=0)
    x = x + x
    x = x * x
    x = jnp.maximum(x + x, 0.0)
    w = x + (-0.5)
    w = w * 0.5
    return w


if __name__ == "__main__":
    key = jax.random.PRNGKey(0)
    # Small NCHW input consistent with the module's usage.
    x = jax.random.normal(key, (2, 4, 16, 16), dtype=jnp.float32)

    out = model_with_functionals(x)
    out = jax.block_until_ready(out)

    ref = _reference(x)
    assert out.shape == (6, 4, 16, 16), out.shape
    assert jnp.allclose(out, ref, atol=0.0, rtol=0.0), "mismatch vs reference"

    # Also exercise a non-128-factor shape to cover the pad/slice path.
    x2 = jax.random.normal(jax.random.PRNGKey(1), (3, 3, 5, 7), dtype=jnp.float32)
    out2 = jax.block_until_ready(model_with_functionals(x2))
    assert out2.shape == (9, 3, 5, 7)
    assert jnp.allclose(out2, _reference(x2), atol=0.0, rtol=0.0)

    print("KERNEL_OK")
</pallas_src>

<mosaic_0001>
module attributes {stable_mosaic.version = 11 : i64} {
  func.func @_functionals_kernel(%arg0: i32, %arg1: memref<8x256xf32, #tpu.memory_space<vmem>>, %arg2: memref<3x8x256xf32, #tpu.memory_space<vmem>>) attributes {dimension_semantics = [#tpu.dimension_semantics<parallel>], iteration_bounds = array<i64: 1>, scalar_prefetch = 0 : i64, scratch_operands = 0 : i64, tpu.core_type = #tpu.core_type<tc>, window_params = [{transform_indices = @transform_0, window_bounds = array<i64: 8, 256>}, {transform_indices = @transform_1, window_bounds = array<i64: 3, 8, 256>}]} {
    %c0 = arith.constant 0 : index
    %c0_0 = arith.constant 0 : index
    %0 = vector.load %arg1[%c0, %c0_0] : memref<8x256xf32, #tpu.memory_space<vmem>>, vector<8x256xf32>
    %1 = arith.addf %0, %0 : vector<8x256xf32>
    %2 = arith.mulf %1, %1 : vector<8x256xf32>
    %3 = arith.addf %2, %2 : vector<8x256xf32>
    %cst = arith.constant 0.000000e+00 : f32
    %4 = vector.broadcast %cst : f32 to vector<8x256xf32>
    %5 = arith.maximumf %3, %4 : vector<8x256xf32>
    %cst_1 = arith.constant -5.000000e-01 : f32
    %6 = vector.broadcast %cst_1 : f32 to vector<8x256xf32>
    %7 = arith.addf %5, %6 : vector<8x256xf32>
    %cst_2 = arith.constant 5.000000e-01 : f32
    %8 = vector.broadcast %cst_2 : f32 to vector<8x256xf32>
    %9 = arith.mulf %7, %8 : vector<8x256xf32>
    %c0_3 = arith.constant 0 : index
    %c0_4 = arith.constant 0 : index
    %c0_5 = arith.constant 0 : index
    %10 = vector.load %arg2[%c0_3, %c0_4, %c0_5] : memref<3x8x256xf32, #tpu.memory_space<vmem>>, vector<1x8x256xf32>
    %11 = vector.shape_cast %10 : vector<1x8x256xf32> to vector<8x256xf32>
    %12 = vector.shape_cast %9 : vector<8x256xf32> to vector<1x8x256xf32>
    tpu.vector_store %arg2[%c0_3, %c0_4, %c0_5], %12 {strides = array<i32>} : memref<3x8x256xf32, #tpu.memory_space<vmem>>, vector<1x8x256xf32>,
    %c1 = arith.constant 1 : index
    %c0_6 = arith.constant 0 : index
    %c0_7 = arith.constant 0 : index
    %13 = vector.load %arg2[%c1, %c0_6, %c0_7] : memref<3x8x256xf32, #tpu.memory_space<vmem>>, vector<1x8x256xf32>
    %14 = vector.shape_cast %13 : vector<1x8x256xf32> to vector<8x256xf32>
    %15 = vector.shape_cast %9 : vector<8x256xf32> to vector<1x8x256xf32>
    tpu.vector_store %arg2[%c1, %c0_6, %c0_7], %15 {strides = array<i32>} : memref<3x8x256xf32, #tpu.memory_space<vmem>>, vector<1x8x256xf32>,
    %c2 = arith.constant 2 : index
    %c0_8 = arith.constant 0 : index
    %c0_9 = arith.constant 0 : index
    %16 = vector.load %arg2[%c2, %c0_8, %c0_9] : memref<3x8x256xf32, #tpu.memory_space<vmem>>, vector<1x8x256xf32>
    %17 = vector.shape_cast %16 : vector<1x8x256xf32> to vector<8x256xf32>
    %18 = vector.shape_cast %9 : vector<8x256xf32> to vector<1x8x256xf32>
    tpu.vector_store %arg2[%c2, %c0_8, %c0_9], %18 {strides = array<i32>} : memref<3x8x256xf32, #tpu.memory_space<vmem>>, vector<1x8x256xf32>,
    return
  }
  func.func @transform_0(%arg0: i32) -> (i32, i32) {
    %c0_i32 = arith.constant 0 : i32
    %c0_i32_0 = arith.constant 0 : i32
    return %arg0, %c0_i32 : i32, i32
  }
  func.func @transform_1(%arg0: i32) -> (i32, i32, i32) {
    %c0_i32 = arith.constant 0 : i32
    %c0_i32_0 = arith.constant 0 : i32
    %c0_i32_1 = arith.constant 0 : i32
    return %c0_i32, %arg0, %c0_i32_0 : i32, i32, i32
  }
}

</mosaic_0001>

<bundles_post_ra>
// kernel: tpu_custom_call.1
= control target key start
LH: loop header
LB: loop body
LE: loop exit
PB: predicated region body
PF: predicated region fallthrough
CT: control target
= control target key end

     0   :  { %6 = vsyncpa [#allocation3], 0  ;;  %s140_s0 = inlined_call_operand.hbm [shape: f32[8,256], index: 0, kind: input, shape index: {}]   ;;  %s141_s1 = inlined_call_operand.hbm [shape: f32[3,8,256], index: 1, kind: output, shape index: {}]  }
   0x1   :  { %7 = vsyncpa [#allocation4], 0  ;;  %s13_s8 = sshll.u32 %s140_s0, 4  ;;  %s120_s9 = smov [#allocation2]   ;;  %s14_s8 = int_to_ptr.hbm [resolvable:$true] %s13_s8 }
   0x2   :  { %s15_s10 = sshll.u32 %s120_s9, 4  ;;  %s16_s10 = int_to_ptr.vmem [resolvable:$true] %s15_s10 }
   0x3   :  { %18 = dma.hbm_to_vmem [thread:$0]  %s14_s8, 256, %s16_s10, [#allocation3]  }
   0x4   :  { %116 = dma.done.wait [#allocation3], 256  }
   0x5   :  { %117 = vsyncadd [#allocation3], 4294967040  ;;  %v23_v0 = vld [vmem:[#allocation2] sm:$0xff]  ;;  %v24_v1 = vld [vmem:[#allocation2 + $0x8] sm:$0xff]  ;;  %s121_s0 = smov [#allocation5]   ;;  %s51_s14 = sshll.u32 %s141_s1, 4  ;;  %s52_s14 = int_to_ptr.hbm [resolvable:$true] %s51_s14 }
   0x6   :  { %v25_v2 = vadd.f32 %v23_v0, %v23_v0  ;;  %v26_v3 = vadd.f32 %v24_v1, %v24_v1  ;;  %s49_s11 = sshll.u32 %s121_s0, 4  ;;  %s122_s15 = smov 256   ;;  %s50_s11 = int_to_ptr.vmem [resolvable:$true] %s49_s11 }
   0x7   :  { %s123_s16 = smov 16  }
   0x8   :  { %v27_v4 = vmul.f32 %v25_v2, %v25_v2  ;;  %v28_v5 = vmul.f32 %v26_v3, %v26_v3 }
   0xa   :  { %v29_v6 = vadd.f32 %v27_v4, %v27_v4  ;;  %v30_v7 = vadd.f32 %v28_v5, %v28_v5 }
   0xc   :  { %v31_v8 = vmax.f32 %v29_v6, 0.0  ;;  %v32_v9 = vmax.f32 %v30_v7, 0.0 }
   0xe   :  { %v33_v10 = vadd.f32 -0.5, %v31_v8  ;;  %v34_v11 = vadd.f32 -0.5, %v32_v9 }
  0x10   :  { %v35_v12 = vmul.f32 0.5, %v33_v10  ;;  %v36_v13 = vmul.f32 0.5, %v34_v11 }
  0x12   :  { %37 = vst [vmem:[#allocation5] sm:$0xff] %v35_v12 }
  0x13   :  { %40 = vst [vmem:[#allocation5 + $0x10] sm:$0xff] %v35_v12 }
  0x14   :  { %43 = vst [vmem:[#allocation5 + $0x20] sm:$0xff] %v35_v12 }
  0x15   :  { %38 = vst [vmem:[#allocation5 + $0x8] sm:$0xff] %v36_v13 }
  0x16   :  { %41 = vst [vmem:[#allocation5 + $0x18] sm:$0xff] %v36_v13 }
  0x17   :  { %44 = vst [vmem:[#allocation5 + $0x28] sm:$0xff] %v36_v13 }
  0x18   :  { %57 = dma.vmem_to_hbm [thread:$0]  %s50_s11, 768, %s52_s14, [#allocation4], %s122_s15, %s122_s15, %s123_s16  }
  0x19   :  { %118 = dma.done.wait [#allocation4], 768  }
  0x1a   :  { %119 = vsyncadd [#allocation4], 4294966528 }
  0x1b   :  { %62 = vsyncpa [#allocation3], 1 }
  0x1c   :  { %63 = vsyncpa [#allocation4], 1 }

</bundles_post_ra>
